<compile_context>
chip_gen: v6e
topology: v6e:2x2x1
jax: 0.10.0
libtpu: 0.0.40
codegen_flags: <defaults>
</compile_context>

<pallas_src>
import functools
import math

import jax
import jax.numpy as jnp
from jax.experimental import pallas as pl
from jax.experimental.pallas import tpu as pltpu


def _round_up(v, m):
    return ((v + m - 1) // m) * m


def ensemble_kernel(x_ref, w_ref, b_ref, out_ref, *, num_models, num_classes):
    """One batch tile: matmul over all members at once, sigmoid, sum, argmax.

    x_ref:   (TB, D)              f32    batch tile (cast to bf16 in-kernel)
    w_ref:   (D, M*num_classes)   bf16   all member weights, member-major lanes
    b_ref:   (1, M*num_classes)   f32    all member biases
    out_ref: (TB, 1)              int32  per-row argmax of summed probabilities
    """
    n = num_models * num_classes

    # In-kernel cast keeps the HBM stream at its source dtype; the MXU matmul
    # runs bf16 x bf16 with f32 accumulation, bias add in f32.
    x = x_ref[...].astype(w_ref.dtype)
    logits = jnp.dot(x, w_ref[...], preferred_element_type=jnp.float32)
    logits = logits + b_ref[...]

    # Elementwise sigmoid (EUP) in f32.
    probs = 1.0 / (1.0 + jnp.exp(-logits))               # (TB, M*nc)

    if n <= 128:
        # Soft voting: sum the per-member probability slabs (static slices,
        # all members span a single vreg lane group).
        summed = probs[:, :num_classes]
        for m in range(1, num_models):
            summed = summed + probs[:, m * num_classes:(m + 1) * num_classes]
    else:
        # Many members: fold the member-sum into a 0/1 selector matmul so the
        # reduction stays lane-aligned on the (underutilized) MXU.
        row = jax.lax.broadcasted_iota(jnp.int32, (n, num_classes), 0)
        col = jax.lax.broadcasted_iota(jnp.int32, (n, num_classes), 1)
        sel = (row % num_classes == col).astype(jnp.float32)
        summed = jnp.dot(probs, sel, preferred_element_type=jnp.float32)

    # In-kernel argmax (first max index, matching torch/jnp argmax tie rule).
    lane = jax.lax.broadcasted_iota(jnp.int32, summed.shape, 1)
    max_v = jnp.max(summed, axis=1, keepdims=True)
    cand = jnp.where(summed == max_v, lane, jnp.int32(num_classes))
    out_ref[...] = jnp.min(cand, axis=1, keepdims=True)


def _device_kind():
    try:
        return jax.devices()[0].device_kind.lower()
    except Exception:
        return ""


def _pick_tb(B, D, kind):
    """Batch tile: sublane-rounded for small B, 128-multiple sized by VMEM."""
    if B <= 128:
        return _round_up(max(B, 1), 8)          # f32 input tile -> sublane 8
    target = 1024 if "v6" in kind else 512      # v6e has headroom (128 MiB)
    if "v7" in kind:
        x_budget = 24 << 20                     # 64 MiB physical VMEM
    elif "v6" in kind:
        x_budget = 56 << 20
    else:
        x_budget = 40 << 20                     # v5e (vmem_limit raised below)
    while target > 128 and 2 * target * D * 4 > x_budget:
        target //= 2
    return min(target, _round_up(B, 128))


def ensemble_forward(x, weights, biases, *, tb=None):
    """x: (B, C, H, W); weights: (M, D, num_classes); biases: (M, num_classes).

    Returns int32 predictions of shape (B,) (soft-voting argmax).
    """
    B = x.shape[0]
    D = math.prod(x.shape[1:])
    M, D_w, NC = weights.shape
    assert D_w == D, (D_w, D)
    N = M * NC

    kind = _device_kind()
    if tb is None:
        tb = _pick_tb(B, D, kind)

    # Flatten NCHW -> (B, D); NO dtype cast and NO pad of the dominant x
    # stream (reshape is free; the bf16 cast happens inside the kernel).
    x_flat = x.reshape(B, D)

    # Pack all members along the lane (N) axis: (M, D, nc) -> (D, M*nc).
    # (If weights are static across calls, hoist this out of the hot path.)
    w_packed = jnp.transpose(weights, (1, 0, 2)).reshape(D, N).astype(jnp.bfloat16)
    b_packed = biases.reshape(1, N).astype(jnp.float32)

    # Explicit scoped-VMEM budget: double-buffered x tile + single-buffered
    # resident weight slab + elementwise temporaries, with headroom.
    n_pad = _round_up(N, 128)
    need = (2 * tb * D * 4            # double-buffered f32 x tiles
            + D * n_pad * 2           # resident bf16 weight slab (1 buffer)
            + 8 * n_pad * 4           # bias (sublane/lane padded)
            + 4 * tb * 128 * 4)       # logits/probs temporaries + output
    limit_cap = (60 << 20) if "v7" in kind else (100 << 20)
    vmem_limit = int(max(32 << 20, min(int(1.3 * need) + (4 << 20), limit_cap)))

    # Only core_parallel actually splits the grid across v7x's two TensorCores;
    # plain "parallel" elsewhere (single-TC v5e/v6e).
    if "v7" in kind:
        dim_sem = (pltpu.CORE_PARALLEL,)
    else:
        dim_sem = ("parallel",)

    kernel = functools.partial(ensemble_kernel, num_models=M, num_classes=NC)

    out = pl.pallas_call(
        kernel,
        out_shape=jax.ShapeDtypeStruct((B, 1), jnp.int32),
        grid=(pl.cdiv(B, tb),),
        in_specs=[
            # Batch tile of activations (f32; partial last tile is masked).
            pl.BlockSpec((tb, D), lambda b: (b, 0)),
            # Packed weights: constant block index -> fetched once; single
            # buffer (no point double-buffering a resident slab).
            pl.BlockSpec((D, N), lambda b: (0, 0),
                         pipeline_mode=pl.Buffered(1)),
            # Packed biases: resident, single buffer.
            pl.BlockSpec((1, N), lambda b: (0, 0),
                         pipeline_mode=pl.Buffered(1)),
        ],
        out_specs=pl.BlockSpec((tb, 1), lambda b: (b, 0)),
        compiler_params=pltpu.CompilerParams(
            dimension_semantics=dim_sem,
            vmem_limit_bytes=vmem_limit,
        ),
    )(x_flat, w_packed, b_packed)

    return out[:, 0]


if __name__ == "__main__":
    B, C, H, W = 2, 4, 16, 16
    num_classes = 4
    num_models = 3
    D = C * H * W

    key = jax.random.PRNGKey(0)
    kx, kw, kb = jax.random.split(key, 3)
    x = jax.random.normal(kx, (B, C, H, W), dtype=jnp.float32)
    weights = 0.1 * jax.random.normal(kw, (num_models, D, num_classes),
                                      dtype=jnp.float32)
    biases = 0.1 * jax.random.normal(kb, (num_models, num_classes),
                                     dtype=jnp.float32)

    preds = ensemble_forward(x, weights, biases)
    preds = jax.block_until_ready(preds)

    # Pure-JAX reference (mirrors PyTorch Ensemble.forward + soft_voting),
    # using the same bf16 matmul inputs / f32 accumulation as the kernel.
    # NOTE: casting x/W to bf16 is an intentional design choice; argmax can
    # flip vs an f32 reference only on near-ties, so the check below tolerates
    # flips where the top-2 summed probabilities are within a small epsilon.
    x_c = x.reshape(B, D).astype(jnp.bfloat16)
    w_c = weights.astype(jnp.bfloat16)
    logits = jnp.einsum("bd,mdc->bmc", x_c, w_c,
                        preferred_element_type=jnp.float32) + biases[None]
    probs = 1.0 / (1.0 + jnp.exp(-logits))      # (B, M, num_classes)
    t_prob = probs.sum(axis=1)                  # sum over models
    ref_preds = jnp.argmax(t_prob, axis=1).astype(jnp.int32)

    assert preds.shape == (B,)
    match = preds == ref_preds
    if not bool(jnp.all(match)):
        top2 = jnp.sort(t_prob, axis=1)[:, -2:]
        near_tie = (top2[:, 1] - top2[:, 0]) <= 1e-3
        assert bool(jnp.all(match | near_tie)), (preds, ref_preds, t_prob)
    print("KERNEL_OK")
</pallas_src>

<mosaic_0001>
module attributes {stable_mosaic.version = 11 : i64} {
  func.func @ensemble_kernel(%arg0: i32, %arg1: memref<8x1024xf32, #tpu.memory_space<vmem>>, %arg2: memref<1024x12xbf16, #tpu.memory_space<vmem>>, %arg3: memref<1x12xf32, #tpu.memory_space<vmem>>, %arg4: memref<8x1xi32, #tpu.memory_space<vmem>>) attributes {dimension_semantics = [#tpu.dimension_semantics<parallel>], iteration_bounds = array<i64: 1>, scalar_prefetch = 0 : i64, scratch_operands = 0 : i64, tpu.core_type = #tpu.core_type<tc>, window_params = [{transform_indices = @transform_0, window_bounds = array<i64: 8, 1024>}, {pipeline_mode = #tpu.pipeline_mode<synchronous>, transform_indices = @transform_1, window_bounds = array<i64: 1024, 12>}, {pipeline_mode = #tpu.pipeline_mode<synchronous>, transform_indices = @transform_2, window_bounds = array<i64: 1, 12>}, {transform_indices = @transform_3, window_bounds = array<i64: 8, 1>}]} {
    %c0 = arith.constant 0 : index
    %c0_0 = arith.constant 0 : index
    %0 = vector.load %arg1[%c0, %c0_0] : memref<8x1024xf32, #tpu.memory_space<vmem>>, vector<8x1024xf32>
    %1 = arith.truncf %0 : vector<8x1024xf32> to vector<8x1024xbf16>
    %c0_1 = arith.constant 0 : index
    %c0_2 = arith.constant 0 : index
    %2 = vector.load %arg2[%c0_1, %c0_2] : memref<1024x12xbf16, #tpu.memory_space<vmem>>, vector<1024x12xbf16>
    %cst = arith.constant dense<0.000000e+00> : vector<8x12xf32>
    %3 = tpu.matmul %1, %2, %cst {dimension_numbers = #tpu.dot_dimension_numbers<[1], [0], [0], [1], [0, 0, 1, 1], [], []>} : vector<8x1024xbf16>, vector<1024x12xbf16>, vector<8x12xf32> -> vector<8x12xf32>
    %c0_3 = arith.constant 0 : index
    %c0_4 = arith.constant 0 : index
    %4 = vector.load %arg3[%c0_3, %c0_4] : memref<1x12xf32, #tpu.memory_space<vmem>>, vector<1x12xf32>
    %5 = vector.broadcast %4 : vector<1x12xf32> to vector<8x12xf32>
    %6 = arith.addf %3, %5 : vector<8x12xf32>
    %cst_5 = arith.constant 0.000000e+00 : f32
    %7 = vector.broadcast %cst_5 : f32 to vector<8x12xf32>
    %8 = arith.subf %7, %6 : vector<8x12xf32>
    %9 = math.exp %8 : vector<8x12xf32>
    %cst_6 = arith.constant 1.000000e+00 : f32
    %10 = vector.broadcast %cst_6 : f32 to vector<8x12xf32>
    %11 = arith.addf %10, %9 : vector<8x12xf32>
    %cst_7 = arith.constant 1.000000e+00 : f32
    %12 = vector.broadcast %cst_7 : f32 to vector<8x12xf32>
    %13 = arith.divf %12, %11 : vector<8x12xf32>
    %14 = vector.extract_strided_slice %13 {offsets = [0, 0], sizes = [8, 4], strides = [1, 1]} : vector<8x12xf32> to vector<8x4xf32>
    %15 = vector.extract_strided_slice %13 {offsets = [0, 4], sizes = [8, 4], strides = [1, 1]} : vector<8x12xf32> to vector<8x4xf32>
    %16 = arith.addf %14, %15 : vector<8x4xf32>
    %17 = vector.extract_strided_slice %13 {offsets = [0, 8], sizes = [8, 4], strides = [1, 1]} : vector<8x12xf32> to vector<8x4xf32>
    %18 = arith.addf %16, %17 : vector<8x4xf32>
    %19 = tpu.iota {dimensions = array<i32: 1>} : vector<8x4xi32>
    %cst_8 = arith.constant dense<0xFF800000> : vector<8xf32>
    %20 = vector.multi_reduction <maximumf>, %18, %cst_8 [1] : vector<8x4xf32> to vector<8xf32>
    %21 = vector.shape_cast %20 : vector<8xf32> to vector<8x1xf32>
    %22 = vector.broadcast %21 : vector<8x1xf32> to vector<8x4xf32>
    %23 = arith.cmpf oeq, %18, %22 : vector<8x4xf32>
    %c4_i32 = arith.constant 4 : i32
    %24 = vector.broadcast %c4_i32 : i32 to vector<8x4xi32>
    %25 = arith.select %23, %19, %24 : vector<8x4xi1>, vector<8x4xi32>
    %cst_9 = arith.constant dense<2147483647> : vector<8xi32>
    %26 = vector.multi_reduction <minsi>, %25, %cst_9 [1] : vector<8x4xi32> to vector<8xi32>
    %27 = vector.shape_cast %26 : vector<8xi32> to vector<8x1xi32>
    %c0_10 = arith.constant 0 : index
    %c0_11 = arith.constant 0 : index
    %28 = vector.load %arg4[%c0_10, %c0_11] : memref<8x1xi32, #tpu.memory_space<vmem>>, vector<8x1xi32>
    tpu.vector_store %arg4[%c0_10, %c0_11], %27 {strides = array<i32>} : memref<8x1xi32, #tpu.memory_space<vmem>>, vector<8x1xi32>,
    return
  }
  func.func @transform_0(%arg0: i32) -> (i32, i32) {
    %c0_i32 = arith.constant 0 : i32
    %c0_i32_0 = arith.constant 0 : i32
    return %arg0, %c0_i32 : i32, i32
  }
  func.func @transform_1(%arg0: i32) -> (i32, i32) {
    %c0_i32 = arith.constant 0 : i32
    %c0_i32_0 = arith.constant 0 : i32
    %c0_i32_1 = arith.constant 0 : i32
    return %c0_i32, %c0_i32_0 : i32, i32
  }
  func.func @transform_2(%arg0: i32) -> (i32, i32) {
    %c0_i32 = arith.constant 0 : i32
    %c0_i32_0 = arith.constant 0 : i32
    %c0_i32_1 = arith.constant 0 : i32
    return %c0_i32, %c0_i32_0 : i32, i32
  }
  func.func @transform_3(%arg0: i32) -> (i32, i32) {
    %c0_i32 = arith.constant 0 : i32
    %c0_i32_0 = arith.constant 0 : i32
    return %arg0, %c0_i32 : i32, i32
  }
}

</mosaic_0001>

<bundles_post_ra>
// kernel: tpu_custom_call.1
= control target key start
LH: loop header
LB: loop body
LE: loop exit
PB: predicated region body
PF: predicated region fallthrough
CT: control target
= control target key end

     0   :  { %v38_v30 = vlaneseq  ;;  %v1115_v35 = vmov 1983009808   ;;  %s1117_s21 = smov 120   ;;  %vm815_vm0 = vcmask 31744   ;;  %vm836_vm3 = vcmask 7168   ;;  %s1372_s0 = inlined_call_operand.vmem [shape: f32[2,1024], index: 0, kind: input, shape index: {}]   ;;  %s1373_s1 = inlined_call_operand.vmem [shape: bf16[1024,12], index: 1, kind: input, shape index: {}]   ;;  %s1374_s2 = inlined_call_operand.vmem [shape: f32[1,12], index: 2, kind: input, shape index: {}]   ;;  %s1375_s3 = inlined_call_operand.vmem [shape: s32[2,1], index: 3, kind: output, shape index: {}]  }
   0x1   :  { %v1035_v0 = vld [vmem:[%s1373_s1 + $0x78] sm:$0xff]   ;;  %v1039_v4 = vld [vmem:[%s1373_s1 + $0x70] sm:$0xff]   ;;  %v1043_v8 = vld [vmem:[%s1373_s1 + $0x68] sm:$0xff]   ;;  %v36_v36 = vunpack.c.l.s4 %v1115_v35 }
   0x2   :  { %v1036_v1 = vld [vmem:[%s1373_s1 + $0xf8] sm:$0xff]   ;;  %944 = vmatprep.subr.bf16.mxu0 %v1035_v0  ;;  %v1040_v5 = vld [vmem:[%s1373_s1 + $0xf0] sm:$0xff]   ;;  %v1044_v9 = vld [vmem:[%s1373_s1 + $0xe8] sm:$0xff]   ;;  %v39_v37 = vshrl.u32 %v38_v30, 7 }
   0x3   :  { %v1037_v2 = vld [vmem:[%s1373_s1 + $0x38] sm:$0xff]   ;;  %966 = vmatprep.subr.bf16.mxu1 %v1036_v1  ;;  %v1041_v6 = vld [vmem:[%s1373_s1 + $0x30] sm:$0xff]   ;;  %v1045_v10 = vld [vmem:[%s1373_s1 + $0x28] sm:$0xff]   ;;  %v37_v40 = vunpack.c.0.s8 %v36_v36 }
   0x4   :  { %v1038_v3 = vld [vmem:[%s1373_s1 + $0xb8] sm:$0xff]   ;;  %945 = vmatpush3.bf16.msra.mxu0 %v1037_v2  ;;  %v1042_v7 = vld [vmem:[%s1373_s1 + $0xb0] sm:$0xff]   ;;  %v1046_v11 = vld [vmem:[%s1373_s1 + $0xa8] sm:$0xff]  }
   0x5   :  { %967 = vmatpush3.bf16.msra.mxu1 %v1038_v3  ;;  %946 = vmatprep.subr.bf16.mxu0 %v1039_v4  ;;  %v1047_v12 = vld [vmem:[%s1373_s1 + $0x60] sm:$0xff]   ;;  %v1051_v16 = vld [vmem:[%s1373_s1 + $0x58] sm:$0xff]   ;;  %v1055_v20 = vld [vmem:[%s1373_s1 + $0x50] sm:$0xff]   ;;  %v1253_v43 = vsub.s32 %v37_v40, %v39_v37 }
   0x6   :  { %968 = vmatprep.subr.bf16.mxu1 %v1040_v5  ;;  %v1048_v13 = vld [vmem:[%s1373_s1 + $0xe0] sm:$0xff]   ;;  %v1052_v17 = vld [vmem:[%s1373_s1 + $0xd8] sm:$0xff]   ;;  %v1056_v21 = vld [vmem:[%s1373_s1 + $0xd0] sm:$0xff]  }
   0x7   :  { %v1049_v14 = vld [vmem:[%s1373_s1 + $0x20] sm:$0xff]   ;;  %v1053_v18 = vld [vmem:[%s1373_s1 + $0x18] sm:$0xff]   ;;  %v1057_v22 = vld [vmem:[%s1373_s1 + $0x10] sm:$0xff]  }
   0x8   :  { %947 = vmatpush3.bf16.msra.mxu0 %v1041_v6  ;;  %v1050_v15 = vld [vmem:[%s1373_s1 + $0xa0] sm:$0xff]   ;;  %v1054_v19 = vld [vmem:[%s1373_s1 + $0x98] sm:$0xff]   ;;  %v1058_v23 = vld [vmem:[%s1373_s1 + $0x90] sm:$0xff]  }
   0x9   :  { %969 = vmatpush3.bf16.msra.mxu1 %v1042_v7  ;;  %948 = vmatprep.subr.bf16.mxu0 %v1043_v8  ;;  %v1059_v24 = vld [vmem:[%s1373_s1 + $0x48] sm:$0xff]   ;;  %v1063_v28 = vld [vmem:[%s1373_s1 + $0x40] sm:$0xff]   ;;  %v1073_v41 = vld [vmem:[%s1373_s1 + $0x178] sm:$0xff]  }
   0xa   :  { %970 = vmatprep.subr.bf16.mxu1 %v1044_v9  ;;  %v1060_v25 = vld [vmem:[%s1373_s1 + $0xc8] sm:$0xff]   ;;  %v1064_v29 = vld [vmem:[%s1373_s1 + $0xc0] sm:$0xff]   ;;  %v1074_v42 = vld [vmem:[%s1373_s1 + $0x1f8] sm:$0xff]  }
   0xb   :  { %v1061_v26 = vld [vmem:[%s1373_s1 + $0x8] sm:$0xff]   ;;  %v1065_v31 = vld [vmem:[%s1373_s1] sm:$0xff]   ;;  %v1075_v52 = vld [vmem:[%s1373_s1 + $0x138] sm:$0xff]  }
   0xc   :  { %949 = vmatpush3.bf16.msra.mxu0 %v1045_v10  ;;  %v1062_v27 = vld [vmem:[%s1373_s1 + $0x88] sm:$0xff]   ;;  %v1066_v32 = vld [vmem:[%s1373_s1 + $0x80] sm:$0xff]   ;;  %v1076_v53 = vld [vmem:[%s1373_s1 + $0x1b8] sm:$0xff]  }
   0xd   :  { %971 = vmatpush3.bf16.msra.mxu1 %v1046_v11  ;;  %950 = vmatprep.subr.bf16.mxu0 %v1047_v12  ;;  %v1067_v33 = vld [vmem:[%s1372_s0] ss:$16 sps:$4 sm:$0xff]   ;;  %v1071_v38 = vld [vmem:[%s1372_s0 + $0x4] ss:$16 sps:$4 sm:$0xff]   ;;  %v1081_v62 = vld [vmem:[%s1373_s1 + $0x168] sm:$0xff]  }
   0xe   :  { %972 = vmatprep.subr.bf16.mxu1 %v1048_v13  ;;  %v1069_v34 = vld [vmem:[%s1372_s0 + $0x20] ss:$16 sps:$4 sm:$0xff]   ;;  %v1072_v39 = vld [vmem:[%s1372_s0 + $0x24] ss:$16 sps:$4 sm:$0xff]   ;;  %v41_v44 = vrot.slane %v1067_v33, %v1253_v43  ;;  %v48_v46 = vrot.slane %v1071_v38, %v1253_v43  ;;  %v1082_v63 = vld [vmem:[%s1373_s1 + $0x1e8] sm:$0xff]  }
   0xf   :  { %v55_v45 = vrot.slane %v1069_v34, %v1253_v43  ;;  %v62_v47 = vrot.slane %v1072_v39, %v1253_v43  ;;  %v1077_v58 = vld [vmem:[%s1373_s1 + $0x170] sm:$0xff]   ;;  %v1083_v0 = vld [vmem:[%s1373_s1 + $0x128] sm:$0xff]   ;;  %v1085_v2 = vld [vmem:[%s1373_s1 + $0x160] sm:$0xff]  }
  0x10   :  { %951 = vmatpush3.bf16.msra.mxu0 %v1049_v14  ;;  %v1078_v59 = vld [vmem:[%s1373_s1 + $0x1f0] sm:$0xff]   ;;  %v1084_v1 = vld [vmem:[%s1373_s1 + $0x1a8] sm:$0xff]   ;;  %v1086_v3 = vld [vmem:[%s1373_s1 + $0x1e0] sm:$0xff]  }
  0x11   :  { %973 = vmatpush3.bf16.msra.mxu1 %v1050_v15  ;;  %952 = vmatprep.subr.bf16.mxu0 %v1051_v16  ;;  %v64_v48 = vcombine.high %v41_v44, %v55_v45  ;;  %v66_v49 = vcombine.high %v48_v46, %v62_v47  ;;  %v63_v50 = vcombine.low %v41_v44, %v55_v45  ;;  %v1079_v60 = vld [vmem:[%s1373_s1 + $0x130] sm:$0xff]   ;;  %v1087_v4 = vld [vmem:[%s1373_s1 + $0x120] sm:$0xff]   ;;  %v1089_v6 = vld [vmem:[%s1373_s1 + $0x158] sm:$0xff]  }
  0x12   :  { %974 = vmatprep.subr.bf16.mxu1 %v1052_v17  ;;  %v65_v51 = vcombine.low %v48_v46, %v62_v47  ;;  %v1080_v61 = vld [vmem:[%s1373_s1 + $0x1b0] sm:$0xff]   ;;  %v1088_v5 = vld [vmem:[%s1373_s1 + $0x1a0] sm:$0xff]   ;;  %v1090_v7 = vld [vmem:[%s1373_s1 + $0x1d8] sm:$0xff]  }
  0x13   :  { %v112_v54 = vpack.c.bf16 %v64_v48, %v64_v48  ;;  %v114_v55 = vpack.c.bf16 %v66_v49, %v66_v49  ;;  %v111_v56 = vpack.c.bf16 %v63_v50, %v63_v50  ;;  %v1091_v8 = vld [vmem:[%s1373_s1 + $0x118] sm:$0xff]   ;;  %v1093_v10 = vld [vmem:[%s1373_s1 + $0x150] sm:$0xff]   ;;  %v1097_v14 = vld [vmem:[%s1373_s1 + $0x148] sm:$0xff]  }
  0x14   :  { %953 = vmatpush3.bf16.msra.mxu0 %v1053_v18  ;;  %v113_v57 = vpack.c.bf16 %v65_v51, %v65_v51  ;;  %v1092_v9 = vld [vmem:[%s1373_s1 + $0x198] sm:$0xff]   ;;  %v1094_v11 = vld [vmem:[%s1373_s1 + $0x1d0] sm:$0xff]   ;;  %v1098_v15 = vld [vmem:[%s1373_s1 + $0x1c8] sm:$0xff]  }
  0x15   :  { %975 = vmatpush3.bf16.msra.mxu1 %v1054_v19  ;;  %954 = vmatprep.subr.bf16.mxu0 %v1055_v20  ;;  %v1095_v12 = vld [vmem:[%s1373_s1 + $0x110] sm:$0xff]   ;;  %v1099_v16 = vld [vmem:[%s1373_s1 + $0x108] sm:$0xff]   ;;  %v1101_v18 = vld [vmem:[%s1373_s1 + $0x140] sm:$0xff]  }
  0x16   :  { %976 = vmatprep.subr.bf16.mxu1 %v1056_v21  ;;  %670 = vmatprep.mubr.bf16.mxu0 %v112_v54  ;;  %v1096_v13 = vld [vmem:[%s1373_s1 + $0x190] sm:$0xff]   ;;  %v1100_v17 = vld [vmem:[%s1373_s1 + $0x188] sm:$0xff]   ;;  %v1102_v19 = vld [vmem:[%s1373_s1 + $0x1c0] sm:$0xff]  }
  0x17   :  { %710 = vmatprep.mubr.bf16.mxu1 %v114_v55  ;;  %v1105_v20 = vld [vmem:[%s1372_s0 + $0x8] ss:$16 sps:$4 sm:$0xff]   ;;  %v879_v48 = vld [vmem:[%s1374_s2] ss:$0 sm:$0xff]  ;;  %s1116_s2 = smov 124  }
  0x18   :  { %955 = vmatpush3.bf16.msra.mxu0 %v1057_v22  ;;  %v1107_v21 = vld [vmem:[%s1372_s0 + $0x28] ss:$16 sps:$4 sm:$0xff]   ;;  %v1109_v22 = vld [vmem:[%s1372_s0 + $0xc] ss:$16 sps:$4 sm:$0xff]  }
  0x19   :  { %977 = vmatpush3.bf16.msra.mxu1 %v1058_v23  ;;  %956 = vmatprep.subr.bf16.mxu0 %v1059_v24  ;;  %v1110_v23 = vld [vmem:[%s1372_s0 + $0x2c] ss:$16 sps:$4 sm:$0xff]   ;;  %v77_v24 = vrot.slane %v1105_v20, %v1253_v43 }
  0x1a   :  { %978 = vmatprep.subr.bf16.mxu1 %v1060_v25  ;;  %v91_v25 = vrot.slane %v1107_v21, %v1253_v43 }
  0x1c   :  { %957 = vmatpush3.bf16.msra.mxu0 %v1061_v26  ;;  %v84_v26 = vrot.slane %v1109_v22, %v1253_v43 }
  0x1d   :  { %979 = vmatpush3.bf16.msra.mxu1 %v1062_v27  ;;  %958 = vmatprep.subr.bf16.mxu0 %v1063_v28  ;;  %v1103_v27 = vld [vmem:[%s1373_s1 + $0x100] sm:$0xff]  }
  0x1e   :  { %980 = vmatprep.subr.bf16.mxu1 %v1064_v29  ;;  %v1104_v28 = vld [vmem:[%s1373_s1 + $0x180] sm:$0xff]   ;;  %v98_v29 = vrot.slane %v1110_v23, %v1253_v43 }
  0x20   :  { %959 = vmatpush3.bf16.msra.mxu0 %v1065_v31  ;;  %v100_v31 = vcombine.high %v77_v24, %v91_v25  ;;  %v102_v33 = vcombine.high %v84_v26, %v98_v29  ;;  %v101_v34 = vcombine.low %v84_v26, %v98_v29 }
  0x21   :  { %981 = vmatpush3.bf16.msra.mxu1 %v1066_v32  ;;  %988 = vmatprep.subr.bf16.mxu0 %v1073_v41  ;;  %v99_v32 = vcombine.low %v77_v24, %v91_v25 }
  0x22   :  { %1010 = vmatprep.subr.bf16.mxu1 %v1074_v42  ;;  %v116_v35 = vpack.c.bf16 %v100_v31, %v100_v31  ;;  %v118_v37 = vpack.c.bf16 %v102_v33, %v102_v33  ;;  %v117_v38 = vpack.c.bf16 %v101_v34, %v101_v34 }
  0x23   :  { %671 = vmatmul.mubr.bf16.vlgmr.msra.gmra.mxu0 %v111_v56  ;;  %v115_v36 = vpack.c.bf16 %v99_v32, %v99_v32 }
  0x24   :  { %711 = vmatmul.mubr.bf16.vlgmr.msra.gmra.mxu1 %v113_v57  ;;  %989 = vmatpush3.bf16.msra.mxu0 %v1075_v52 }
  0x25   :  { %1011 = vmatpush3.bf16.msra.mxu1 %v1076_v53  ;;  %990 = vmatprep.subr.bf16.mxu0 %v1077_v58 }
  0x26   :  { %1012 = vmatprep.subr.bf16.mxu1 %v1078_v59  ;;  %750 = vmatprep.mubr.bf16.mxu0 %v116_v35 }
  0x27   :  { %790 = vmatprep.mubr.bf16.mxu1 %v118_v37 }
  0x28   :  { %991 = vmatpush3.bf16.msra.mxu0 %v1079_v60 }
  0x29   :  { %1013 = vmatpush3.bf16.msra.mxu1 %v1080_v61  ;;  %992 = vmatprep.subr.bf16.mxu0 %v1081_v62 }
  0x2a   :  { %1014 = vmatprep.subr.bf16.mxu1 %v1082_v63 }
  0x2c   :  { %993 = vmatpush3.bf16.msra.mxu0 %v1083_v0 }
  0x2d   :  { %1015 = vmatpush3.bf16.msra.mxu1 %v1084_v1  ;;  %994 = vmatprep.subr.bf16.mxu0 %v1085_v2 }
  0x2e   :  { %1016 = vmatprep.subr.bf16.mxu1 %v1086_v3 }
  0x30   :  { %995 = vmatpush3.bf16.msra.mxu0 %v1087_v4 }
  0x31   :  { %1017 = vmatpush3.bf16.msra.mxu1 %v1088_v5  ;;  %996 = vmatprep.subr.bf16.mxu0 %v1089_v6 }
  0x32   :  { %1018 = vmatprep.subr.bf16.mxu1 %v1090_v7 }
  0x34   :  { %997 = vmatpush3.bf16.msra.mxu0 %v1091_v8 }
  0x35   :  { %1019 = vmatpush3.bf16.msra.mxu1 %v1092_v9  ;;  %998 = vmatprep.subr.bf16.mxu0 %v1093_v10  ;;  %v814_v10 = vand.u32 127, %v38_v30 }
  0x36   :  { %1020 = vmatprep.subr.bf16.mxu1 %v1094_v11 }
  0x38   :  { %999 = vmatpush3.bf16.msra.mxu0 %v1095_v12 }
  0x39   :  { %1021 = vmatpush3.bf16.msra.mxu1 %v1096_v13  ;;  %1000 = vmatprep.subr.bf16.mxu0 %v1097_v14 }
  0x3a   :  { %1022 = vmatprep.subr.bf16.mxu1 %v1098_v15 }
  0x3c   :  { %1001 = vmatpush3.bf16.msra.mxu0 %v1099_v16 }
  0x3d   :  { %1023 = vmatpush3.bf16.msra.mxu1 %v1100_v17  ;;  %1002 = vmatprep.subr.bf16.mxu0 %v1101_v18 }
  0x3e   :  { %1024 = vmatprep.subr.bf16.mxu1 %v1102_v19 }
  0x40   :  { %1003 = vmatpush3.bf16.msra.mxu0 %v1103_v27 }
  0x41   :  { %1025 = vmatpush3.bf16.msra.mxu1 %v1104_v28 }
  0x43   :  { %751 = vmatmul.mubr.bf16.vlgmr.msra.gmra.mxu0 %v115_v36 }
  0x44   :  { %791 = vmatmul.mubr.bf16.vlgmr.msra.gmra.mxu1 %v117_v38 }
  0xe3   :  { %v960_v39 = vpop.f32.mrf.mxu0 }
  0xe4   :  { %v982_v40 = vpop.f32.mrf.mxu1 }
  0xe5   :  { %v961_v41 = vpop.f32.mrf.mxu0 }
  0xe6   :  { %v983_v42 = vpop.f32.mrf.mxu1  ;;  %v962_v47 = vadd.f32 %v961_v41, %v960_v39 }
  0xe7   :  { %v963_v43 = vpop.f32.mrf.mxu0  ;;  %v984_v50 = vadd.f32 %v983_v42, %v982_v40 }
  0xe8   :  { %v985_v44 = vpop.f32.mrf.mxu1  ;;  %v673_v49 = vadd.f32 %v962_v47, %v879_v48 }
  0xe9   :  { %v964_v45 = vpop.f32.mrf.mxu0 }
  0xea   :  { %v986_v46 = vpop.f32.mrf.mxu1  ;;  %v713_v55 = vadd.f32 %v984_v50, %v673_v49 }
 0x103   :  { %v1004_v51 = vpop.f32.mrf.mxu0 }
 0x104   :  { %v1026_v52 = vpop.f32.mrf.mxu1 }
 0x105   :  { %v1005_v53 = vpop.f32.mrf.mxu0 }
 0x106   :  { %v1027_v54 = vpop.f32.mrf.mxu1  ;;  %v1006_v56 = vadd.f32 %v1005_v53, %v1004_v51 }
 0x107   :  { %v1007_v57 = vpop.f32.mrf.mxu0  ;;  %v1028_v60 = vadd.f32 %v1027_v54, %v1026_v52 }
 0x108   :  { %v1029_v58 = vpop.f32.mrf.mxu1  ;;  %v753_v59 = vadd.f32 %v1006_v56, %v713_v55 }
 0x109   :  { %v1008_v61 = vpop.f32.mrf.mxu0 }
 0x10a   :  { %v1030_v62 = vpop.f32.mrf.mxu1  ;;  %v793_v63 = vadd.f32 %v1028_v60, %v753_v59 }
 0x10c   :  { %v798_v0 = vsub.f32 0.0, %v793_v63 }
 0x10e   :  { %v799_v1 = vmul.f32 1.442695, %v798_v0 }
 0x110   :  { %1111 = vpow2.f32 %v799_v1 }
 0x11d   :  { %v1112_v2 = vpop.eup %1111 }
 0x11e   :  { %v801_v3 = vadd.f32 1.0, %v1112_v2 }
 0x120   :  { %1113 = vrcp.f32 %v801_v3 }
 0x12d   :  { %v1114_v4 = vpop.eup %1113 }
 0x12e   :  { %805 = vrot.lane.b32.xlu0 %v1114_v4, %s1116_s2 }
 0x132   :  { %809 = vrot.lane.b32.xlu0 %v1114_v4, %s1117_s21 }
 0x1a0   :  { %v806_v5 = vpop.permute.xlu0 %805 }
 0x1a1   :  { %v808_v6 = vadd.f32 %v1114_v4, %v806_v5 }
 0x1a4   :  { %v810_v7 = vpop.permute.xlu0 %809 }
 0x1a5   :  { %v812_v8 = vadd.f32 %v810_v7, %v808_v6 }
 0x1a7   :  { %v816_v9 = vsel %vm815_vm0, %v812_v8, -inf }
 0x1a8   :  { %817 = vmax.xlane.f32.xlu1 %v816_v9 }
 0x231   :  { %v818_v11 = vpop.xlane.xlu1 %817 }
 0x232   :  { %vm819_vm1 = vcmp.eq.f32.partialorder %v812_v8, %v818_v11 }
 0x233   :  { %v820_v12 = vsel %vm819_vm1, %v814_v10, 4 }
 0x234   :  { %v821_v13 = vsel %vm815_vm0, %v820_v12, 2147483647 }
 0x235   :  { %v823_v14 = vshra.s32 %v821_v13, 16  ;;  %v822_v16 = vand.u32 65535, %v821_v13 }
 0x237   :  { %v825_v15 = vcvt.s32.f32 %v823_v14  ;;  %v824_v18 = vcvt.s32.f32 %v822_v16 }
 0x239   :  { %826 = vmin.xlane.f32.xlu1 %v825_v15 }
 0x2c2   :  { %v827_v17 = vpop.xlane.xlu1 %826 }
 0x2c3   :  { %vm828_vm2 = vcmp.eq.f32.partialorder %v825_v15, %v827_v17  ;;  %v833_v20 = vcvt.f32.s32 %v827_v17 }
 0x2c4   :  { %v829_v19 = vsel %vm828_vm2, %v824_v18, inf }
 0x2c5   :  { %830 = vmin.xlane.f32.xlu0 %v829_v19  ;;  %v834_v22 = vshll.u32 %v833_v20, 16 }
 0x34e   :  { %v831_v21 = vpop.xlane.xlu0 %830 }
 0x34f   :  { %v832_v23 = vcvt.f32.s32 %v831_v21 }
 0x351   :  { %v835_v24 = vadd.s32 %v834_v22, %v832_v23 }
 0x353   :  { %837 = vst.msk [vmem:[#allocation2] sm:$0xff] %vm836_vm3, %v835_v24 }
 0x35a   :  { %v856_v30 = vld [vmem:[#allocation2] sm:$0x3] }
 0x35b   :  { %857 = vst [vmem:[%s1375_s3] sm:$0x3] %v856_v30 }

</bundles_post_ra>
